<compile_context>
chip_gen: v5e
topology: v5e:2x2
jax: 0.10.0
libtpu: 0.0.40
codegen_flags: <defaults>
</compile_context>

<pallas_src>
import functools
import math

import jax
import jax.numpy as jnp
from jax import lax
from jax.experimental import pallas as pl
from jax.experimental.pallas import tpu as pltpu


# ----------------------------------------------------------------------------
# Small tiling helpers (pure Python, shapes are static under jit)
# ----------------------------------------------------------------------------
def _row_tile(Ho, Wo, target_rows=1024):
    """Largest divisor of Ho such that tile_rows * Wo <= ~target_rows."""
    t = max(1, min(Ho, target_rows // max(Wo, 1)))
    while Ho % t:
        t -= 1
    return t


def _matmul_tile(M, target=512):
    if M <= target:
        return M
    t = target - target % 8
    while t >= 8:
        if M % t == 0:
            return t
        t -= 8
    return M


def _ew_tile(rows, target=2048):
    if rows <= target:
        return rows
    t = target - target % 8
    while t >= 8:
        if rows % t == 0:
            return t
        t -= 8
    return rows


# ----------------------------------------------------------------------------
# Pallas kernels
# ----------------------------------------------------------------------------
def _conv_tap_kernel(x_ref, w_ref, b_ref, o_ref, *rest, kh, kw, Wo,
                     activation, emit_pool):
    """One (row-tile, row-tap) grid step of a stride-1 conv.

    x_ref : (1, tr, Wp, Cin)  bf16   -- row-tap `t` of the padded input, rows of tile i
    w_ref : (1, kw, Cin, Cout) bf16  -- the kw sub-kernels of row-tap `t`
    b_ref : (1, Cout) f32
    o_ref : (tr, Wo, Cout) f32       -- revisited across the tap axis
    rest  : (pool_sums_ref?, acc_ref)
    """
    if emit_pool:
        s_ref, acc_ref = rest
    else:
        (acc_ref,) = rest

    t = pl.program_id(1)

    @pl.when(t == 0)
    def _():
        acc_ref[...] = jnp.zeros_like(acc_ref)

    tr = x_ref.shape[1]
    cin = x_ref.shape[3]
    part = None
    for dx in range(kw):
        xs = x_ref[0, :, dx:dx + Wo, :]               # (tr, Wo, Cin) bf16
        xs = xs.reshape(tr * Wo, cin)
        d = jnp.dot(xs, w_ref[0, dx], preferred_element_type=jnp.float32)
        part = d if part is None else part + d
    acc_ref[...] += part

    @pl.when(t == kh - 1)
    def _():
        res = acc_ref[...] + b_ref[...]               # (tr*Wo, Cout) f32
        if activation == "relu":
            res = jnp.maximum(res, 0.0)
        elif activation == "sigmoid":
            res = jax.nn.sigmoid(res)
        o_ref[...] = res.reshape(o_ref.shape)
        if emit_pool:
            # per-tile channel sums over the left / right halves of the width
            row = lax.broadcasted_iota(jnp.int32, res.shape, 0)
            left = (row % Wo) < (Wo // 2)
            s_ref[0, 0:1, :] = jnp.sum(jnp.where(left, res, 0.0), axis=0, keepdims=True)
            s_ref[0, 1:2, :] = jnp.sum(jnp.where(left, 0.0, res), axis=0, keepdims=True)


def _mm_bias_act_kernel(x_ref, w_ref, b_ref, o_ref, *, activation):
    acc = jnp.dot(x_ref[...], w_ref[...], preferred_element_type=jnp.float32)
    acc = acc + b_ref[...]
    if activation == "relu":
        acc = jnp.maximum(acc, 0.0)
    elif activation == "sigmoid":
        acc = jax.nn.sigmoid(acc)
    o_ref[...] = acc.astype(o_ref.dtype)


def _spp_mlp_kernel(x_ref, w1_ref, b1_ref, w2_ref, b2_ref, w3_ref, b3_ref, o_ref):
    h = jnp.dot(x_ref[...], w1_ref[...], preferred_element_type=jnp.float32) + b1_ref[...]
    h = jnp.maximum(h, 0.0)
    h = jnp.dot(h, w2_ref[...], preferred_element_type=jnp.float32) + b2_ref[...]
    h = jnp.maximum(h, 0.0)
    h = jnp.dot(h, w3_ref[...], preferred_element_type=jnp.float32) + b3_ref[...]
    o_ref[...] = jax.nn.sigmoid(h)


def _scale_add_kernel(x_ref, net_ref, s_ref, o_ref):
    o_ref[...] = x_ref[...] + net_ref[...] * s_ref[...]


_VMEM_LIMIT = 64 * 1024 * 1024


# ----------------------------------------------------------------------------
# Conv wrappers
# ----------------------------------------------------------------------------
@functools.partial(jax.jit, static_argnames=("pad_h", "pad_w", "activation", "emit_pool"))
def _conv_s1_tap(x, w, b, pad_h=(1, 1), pad_w=(1, 1), activation="none", emit_pool=False):
    """Stride-1 conv via the row-tap kernel (no im2col in HBM)."""
    N, H, W, Cin = x.shape
    kh, kw, _, Cout = w.shape
    xp = jnp.pad(x, ((0, 0), pad_h, pad_w, (0, 0)))
    Hp, Wp = xp.shape[1], xp.shape[2]
    Ho, Wo = Hp - kh + 1, Wp - kw + 1
    R = N * Ho
    tr = _row_tile(Ho, Wo)
    num_tiles = R // tr

    # kh row-shifted views (the only duplication; 3x rows, bf16), fused by XLA.
    xt = jnp.stack([xp[:, dy:dy + Ho, :, :] for dy in range(kh)], axis=0)
    xt = xt.reshape(kh, R, Wp, Cin).astype(jnp.bfloat16)
    wt = w.astype(jnp.bfloat16)                       # (kh, kw, Cin, Cout)
    bt = b.reshape(1, Cout).astype(jnp.float32)

    kern = functools.partial(_conv_tap_kernel, kh=kh, kw=kw, Wo=Wo,
                             activation=activation, emit_pool=emit_pool)
    out_shape = [jax.ShapeDtypeStruct((R, Wo, Cout), jnp.float32)]
    out_specs = [pl.BlockSpec((tr, Wo, Cout), lambda i, t: (i, 0, 0))]
    if emit_pool:
        out_shape.append(jax.ShapeDtypeStruct((num_tiles, 2, Cout), jnp.float32))
        out_specs.append(pl.BlockSpec((1, 2, Cout), lambda i, t: (i, 0, 0)))

    res = pl.pallas_call(
        kern,
        grid=(num_tiles, kh),
        in_specs=[
            pl.BlockSpec((1, tr, Wp, Cin), lambda i, t: (t, i, 0, 0)),
            pl.BlockSpec((1, kw, Cin, Cout), lambda i, t: (t, 0, 0, 0)),
            pl.BlockSpec((1, Cout), lambda i, t: (0, 0)),
        ],
        out_specs=tuple(out_specs) if emit_pool else out_specs[0],
        out_shape=tuple(out_shape) if emit_pool else out_shape[0],
        scratch_shapes=[pltpu.VMEM((tr * Wo, Cout), jnp.float32)],
        compiler_params=pltpu.CompilerParams(
            dimension_semantics=("parallel", "arbitrary"),
            vmem_limit_bytes=_VMEM_LIMIT),
    )(xt, wt, bt)

    if emit_pool:
        out, sums = res
        return out.reshape(N, Ho, Wo, Cout), sums
    return res.reshape(N, Ho, Wo, Cout)


def _matmul_bias_act(x, w, b, activation="none"):
    """x: (M, K) bf16, w: (K, N) bf16, b: (1, N) f32 -> (M, N) f32, tiled over M."""
    M, K = x.shape
    Nc = w.shape[1]
    tm = _matmul_tile(M)
    kern = functools.partial(_mm_bias_act_kernel, activation=activation)
    return pl.pallas_call(
        kern,
        grid=(M // tm,),
        in_specs=[pl.BlockSpec((tm, K), lambda i: (i, 0)),
                  pl.BlockSpec((K, Nc), lambda i: (0, 0)),
                  pl.BlockSpec((1, Nc), lambda i: (0, 0))],
        out_specs=pl.BlockSpec((tm, Nc), lambda i: (i, 0)),
        out_shape=jax.ShapeDtypeStruct((M, Nc), jnp.float32),
        compiler_params=pltpu.CompilerParams(
            dimension_semantics=("parallel",),
            vmem_limit_bytes=_VMEM_LIMIT),
    )(x, w, b)


@functools.partial(jax.jit, static_argnames=("pad_h", "pad_w", "stride", "activation"))
def _conv_im2col(x, w, b, pad_h=(1, 1), pad_w=(1, 1), stride=1, activation="none"):
    """Fallback path (stride-2 convs and very narrow feature maps): im2col + tiled matmul."""
    N, H, W, Cin = x.shape
    kh, kw, _, Cout = w.shape
    xp = jnp.pad(x, ((0, 0), pad_h, pad_w, (0, 0)))
    Hp, Wp = xp.shape[1], xp.shape[2]
    Ho = (Hp - kh) // stride + 1
    Wo = (Wp - kw) // stride + 1
    cols = []
    for dy in range(kh):
        for dx in range(kw):
            sl = lax.slice(
                xp, (0, dy, dx, 0),
                (N, dy + stride * (Ho - 1) + 1, dx + stride * (Wo - 1) + 1, Cin),
                (1, stride, stride, 1))
            cols.append(sl)
    patches = jnp.concatenate(cols, axis=-1).reshape(N * Ho * Wo, kh * kw * Cin)
    out = _matmul_bias_act(patches.astype(jnp.bfloat16),
                           w.reshape(kh * kw * Cin, Cout).astype(jnp.bfloat16),
                           b.reshape(1, Cout).astype(jnp.float32),
                           activation=activation)
    return out.reshape(N, Ho, Wo, Cout)


def conv2d(x, w, b, stride=1, pad_h=(1, 1), pad_w=(1, 1), activation="none",
           emit_pool=False):
    """NHWC conv.  Returns out (and pooled half-width sums when emit_pool=True)."""
    kw_ = w.shape[1]
    Wo = (x.shape[2] + pad_w[0] + pad_w[1] - kw_) // stride + 1
    if stride == 1 and Wo % 16 == 0:
        return _conv_s1_tap(x, w, b, pad_h=pad_h, pad_w=pad_w,
                            activation=activation, emit_pool=emit_pool)
    out = _conv_im2col(x, w, b, pad_h=pad_h, pad_w=pad_w, stride=stride,
                       activation=activation)
    return (out, None) if emit_pool else out


def conv_transpose2d(x, w, b):
    """ConvTranspose2d(k=4, s=2, p=1) equivalent via sub-pixel decomposition:
    4 phase (2x2, stride-1) convs on the *undilated* input, then interleave.
    Numerically identical to a stride-1 k=4 pad=2 correlation over the 2x zero-dilated
    input (the definition used for the synthetic weights).
    TODO(synk): real PyTorch ConvTranspose2d weights would additionally need a spatial
    flip and (Cin, Cout) transpose before being used here."""
    N, H, W, _ = x.shape
    Cout = w.shape[-1]
    phases = []
    for a in range(2):
        for c in range(2):
            ph = (1, 0) if a == 0 else (0, 1)
            pw = (1, 0) if c == 0 else (0, 1)
            phases.append(conv2d(x, w[a::2, c::2], b, pad_h=ph, pad_w=pw))
    ys = jnp.stack(phases, axis=3)                    # (N, H, W, 4, Cout), order (a, c)
    ys = ys.reshape(N, H, W, 2, 2, Cout)
    ys = jnp.transpose(ys, (0, 1, 3, 2, 4, 5)).reshape(N, 2 * H, 2 * W, Cout)
    return ys


def bilinear_resize(x, new_h, new_w):
    # matches F.interpolate(mode='bilinear', align_corners=False) (no antialias)
    N, H, W, C = x.shape
    return jax.image.resize(x, (N, new_h, new_w, C), method="bilinear", antialias=False)


# ----------------------------------------------------------------------------
# SPP attention (fused MLP kernel) and scale/residual kernel
# ----------------------------------------------------------------------------
@jax.jit
def spp_mlp(spp, w1, b1, w2, b2, w3, b3):
    Nb = spp.shape[0]
    C = w3.shape[1]
    return pl.pallas_call(
        _spp_mlp_kernel,
        out_shape=jax.ShapeDtypeStruct((Nb, C), jnp.float32),
        in_specs=[pl.BlockSpec(memory_space=pltpu.MemorySpace.VMEM)] * 7,
        out_specs=pl.BlockSpec(memory_space=pltpu.MemorySpace.VMEM),
        compiler_params=pltpu.CompilerParams(vmem_limit_bytes=_VMEM_LIMIT),
    )(spp, w1, b1, w2, b2, w3, b3)


def spp_attention_fwd(p, net, pool_sums):
    """net: (N,Ho,Wo,C); pool_sums: (tiles, 2, C) partial half-width sums or None."""
    N, Ho, Wo, C = net.shape
    wl = Wo // 2
    wr = Wo - wl
    if pool_sums is not None:
        s = pool_sums.reshape(N, -1, 2, C).sum(axis=1)        # (N, 2, C)
        left_s, right_s = s[:, 0, :], s[:, 1, :]
    else:
        left_s = jnp.sum(net[:, :, :wl, :], axis=(1, 2))
        right_s = jnp.sum(net[:, :, wl:, :], axis=(1, 2))
    feats = []
    for k in p["cfg"]:
        if k == 1:                                            # pool1_1: global mean
            feats.append((left_s + right_s) / float(Ho * Wo))
        elif k == 2:                                          # pool1_2: left / right halves
            feats.append(left_s / float(Ho * wl))
            feats.append(right_s / float(Ho * wr))
        else:
            # TODO(synk): pool2_2 / pool2_4 / pool4_4 not needed for spp=(1,) and (2,1)
            raise NotImplementedError(f"spp level {k} not implemented")
    spp = jnp.concatenate(feats, axis=-1)                     # (N, n*C)
    return spp_mlp(spp,
                   p["d1"]["w"], p["d1"]["b"].reshape(1, -1),
                   p["d2"]["w"], p["d2"]["b"].reshape(1, -1),
                   p["d3"]["w"], p["d3"]["b"].reshape(1, -1))


@jax.jit
def scale_residual_add(x, net, scale):
    """x, net: (N,H,W,C); scale: (N,C). Returns x + net * scale[:, None, None, :]."""
    N, H, W, C = x.shape
    HW = H * W
    t = _ew_tile(HW)
    xf = x.reshape(N, HW, C)
    nf = net.reshape(N, HW, C)
    sf = scale.reshape(N, 1, C)
    out = pl.pallas_call(
        _scale_add_kernel,
        grid=(N, HW // t),
        in_specs=[pl.BlockSpec((1, t, C), lambda n, i: (n, i, 0)),
                  pl.BlockSpec((1, t, C), lambda n, i: (n, i, 0)),
                  pl.BlockSpec((1, 1, C), lambda n, i: (n, 0, 0))],
        out_specs=pl.BlockSpec((1, t, C), lambda n, i: (n, i, 0)),
        out_shape=jax.ShapeDtypeStruct((N, HW, C), jnp.float32),
        compiler_params=pltpu.CompilerParams(
            dimension_semantics=("parallel", "parallel"),
            vmem_limit_bytes=_VMEM_LIMIT),
    )(xf, nf, sf)
    return out.reshape(N, H, W, C)


# ----------------------------------------------------------------------------
# Parameters (deterministic synthetic init)
# ----------------------------------------------------------------------------
class ParamGen:
    def __init__(self, seed=0):
        self._key = jax.random.PRNGKey(seed)
        self._n = 0

    def _next(self):
        k = jax.random.fold_in(self._key, self._n)
        self._n += 1
        return k

    def conv(self, kh, kw, cin, cout):
        std = 1.0 / math.sqrt(kh * kw * cin)
        w = jax.random.normal(self._next(), (kh, kw, cin, cout), jnp.float32) * std
        b = jax.random.normal(self._next(), (cout,), jnp.float32) * 0.01
        return {"w": w, "b": b}

    def linear(self, cin, cout):
        std = 1.0 / math.sqrt(cin)
        w = jax.random.normal(self._next(), (cin, cout), jnp.float32) * std
        b = jax.random.normal(self._next(), (cout,), jnp.float32) * 0.01
        return {"w": w, "b": b}


def init_spp(pg, c, spp):
    n = sum(spp)
    return {"cfg": tuple(spp),
            "d1": pg.linear(n * c, c),
            "d2": pg.linear(c, c // 16),
            "d3": pg.linear(c // 16, c)}


def init_resblock(pg, c, spp):
    return {"conv1": pg.conv(3, 3, c, c),
            "conv2": pg.conv(3, 3, c, c),
            "spp": init_spp(pg, c, spp)}


def init_encoder(pg, inchannel, spp):
    p = {"layer1": pg.conv(3, 3, inchannel, 32)}
    for name in ("layer2", "layer3", "layer4", "layer4p"):
        p[name] = init_resblock(pg, 32, spp)
    p["layer5"] = pg.conv(3, 3, 32, 64)
    for name in ("layer6", "layer7", "layer8", "layer8p"):
        p[name] = init_resblock(pg, 64, spp)
    p["layer9"] = pg.conv(3, 3, 64, 128)
    for name in ("layer10", "layer11", "layer12", "layer12p"):
        p[name] = init_resblock(pg, 128, spp)
    return p


def init_decoder(pg, spp, outchannel=3):
    p = {}
    for name in ("layer13p", "layer13", "layer14", "layer15"):
        p[name] = init_resblock(pg, 128, spp)
    p["layer16"] = pg.conv(4, 4, 128, 64)   # conv-transpose-equivalent weights
    for name in ("layer17p", "layer17", "layer18", "layer19"):
        p[name] = init_resblock(pg, 64, spp)
    p["layer20"] = pg.conv(4, 4, 64, 32)    # conv-transpose-equivalent weights
    for name in ("layer21p", "layer21", "layer22", "layer23"):
        p[name] = init_resblock(pg, 32, spp)
    p["layer24"] = pg.conv(3, 3, 32, outchannel)
    return p


def init_model(seed=0):
    pg = ParamGen(seed)
    return {"encode1": init_encoder(pg, 6, (1,)),
            "encode2": init_encoder(pg, 6, (2, 1)),
            "decode1": init_decoder(pg, (1,)),
            "decode2": init_decoder(pg, (2, 1))}


# ----------------------------------------------------------------------------
# Module forward functions (mirroring the PyTorch modules)
# ----------------------------------------------------------------------------
def resblock_fwd(p, x):
    h = conv2d(x, p["conv1"]["w"], p["conv1"]["b"], activation="relu")
    net, sums = conv2d(h, p["conv2"]["w"], p["conv2"]["b"], activation="none",
                       emit_pool=True)
    scale = spp_attention_fwd(p["spp"], net, sums)
    return scale_residual_add(x, net, scale)


def encoder_fwd(p, x):
    x = conv2d(x, p["layer1"]["w"], p["layer1"]["b"])
    x = resblock_fwd(p["layer2"], x)
    x = resblock_fwd(p["layer3"], x)
    x = resblock_fwd(p["layer4"], x)
    enc1_4 = resblock_fwd(p["layer4p"], x)
    x = conv2d(enc1_4, p["layer5"]["w"], p["layer5"]["b"], stride=2)
    x = resblock_fwd(p["layer6"], x)
    x = resblock_fwd(p["layer7"], x)
    x = resblock_fwd(p["layer8"], x)
    enc2_4 = resblock_fwd(p["layer8p"], x)
    x = conv2d(enc2_4, p["layer9"]["w"], p["layer9"]["b"], stride=2)
    x = resblock_fwd(p["layer10"], x)
    x = resblock_fwd(p["layer11"], x)
    x = resblock_fwd(p["layer12"], x)
    x = resblock_fwd(p["layer12p"], x)
    return enc1_4, enc2_4, x


def decoder_fwd(p, enc1_4, enc2_4, x):
    x = resblock_fwd(p["layer13p"], x)
    x = resblock_fwd(p["layer13"], x)
    x = resblock_fwd(p["layer14"], x)
    x = resblock_fwd(p["layer15"], x)
    x = conv_transpose2d(x, p["layer16"]["w"], p["layer16"]["b"])
    x = resblock_fwd(p["layer17p"], x + enc2_4)
    x = resblock_fwd(p["layer17"], x)
    x = resblock_fwd(p["layer18"], x)
    x = resblock_fwd(p["layer19"], x)
    x = conv_transpose2d(x, p["layer20"]["w"], p["layer20"]["b"])
    x = resblock_fwd(p["layer21p"], x + enc1_4)
    x = resblock_fwd(p["layer21"], x)
    x = resblock_fwd(p["layer22"], x)
    x = resblock_fwd(p["layer23"], x)
    x = conv2d(x, p["layer24"]["w"], p["layer24"]["b"])
    return x


def encode_decode_level(params, x, last_scale_out):
    enc1_4, enc2_4, feature2 = encoder_fwd(
        params["encode2"], jnp.concatenate([x, last_scale_out], axis=-1))
    residual2 = decoder_fwd(params["decode2"], enc1_4, enc2_4, feature2)
    enc1_4, enc2_4, tmp = encoder_fwd(
        params["encode1"], jnp.concatenate([x, residual2], axis=-1))
    feature1 = tmp + feature2
    y = decoder_fwd(params["decode1"], enc1_4, enc2_4, feature1)
    return residual2, y


def dccan_forward(params, x_nchw):
    """x_nchw: (N, 3, H, W) float32.  Returns dict of NCHW outputs R3/I3/R2/I2/R1/I1."""
    x = jnp.transpose(x_nchw, (0, 2, 3, 1))     # NCHW -> NHWC
    N, H, W, C = x.shape
    out = {}

    B3 = bilinear_resize(x, H // 4, W // 4)
    R3, I3 = encode_decode_level(params, B3, B3)
    out["R3"], out["I3"] = R3, I3
    I3 = lax.stop_gradient(I3)                  # .detach()

    B2 = bilinear_resize(x, H // 2, W // 2)
    I3u = bilinear_resize(I3, H // 2, W // 2)
    R2, I2 = encode_decode_level(params, B2, I3u)
    out["R2"], out["I2"] = R2, I2
    I2 = lax.stop_gradient(I2)                  # .detach()

    I2u = bilinear_resize(I2, H, W)
    R1, I1 = encode_decode_level(params, x, I2u)
    out["R1"], out["I1"] = R1, I1

    return {k: jnp.transpose(v, (0, 3, 1, 2)) for k, v in out.items()}   # back to NCHW


# ----------------------------------------------------------------------------
# Main
# ----------------------------------------------------------------------------
if __name__ == "__main__":
    key = jax.random.PRNGKey(0)
    # Smallest spatial size consistent with the module: input/4 (scale 3) then /4 inside
    # the encoder must still be >= 2 for the SPP half-width pooling -> H=W=32 minimum.
    x = jax.random.normal(key, (1, 3, 32, 32), dtype=jnp.float32)

    params = init_model(seed=0)
    out = dccan_forward(params, x)
    out = jax.block_until_ready(out)

    # sanity on shapes (PyTorch NCHW convention)
    assert out["I1"].shape == (1, 3, 32, 32)
    assert out["I2"].shape == (1, 3, 16, 16)
    assert out["I3"].shape == (1, 3, 8, 8)
    assert out["R1"].shape == (1, 3, 32, 32)

    print("KERNEL_OK")
</pallas_src>

<mosaic_0001>
module attributes {stable_mosaic.version = 11 : i64} {
  func.func @_mm_bias_act_kernel(%arg0: i32, %arg1: memref<64x54xbf16, #tpu.memory_space<vmem>>, %arg2: memref<54x32xbf16, #tpu.memory_space<vmem>>, %arg3: memref<1x32xf32, #tpu.memory_space<vmem>>, %arg4: memref<64x32xf32, #tpu.memory_space<vmem>>) attributes {dimension_semantics = [#tpu.dimension_semantics<parallel>], iteration_bounds = array<i64: 1>, scalar_prefetch = 0 : i64, scratch_operands = 0 : i64, tpu.core_type = #tpu.core_type<tc>, window_params = [{transform_indices = @transform_0, window_bounds = array<i64: 64, 54>}, {pipeline_mode = #tpu.pipeline_mode<synchronous>, transform_indices = @transform_1, window_bounds = array<i64: 54, 32>}, {pipeline_mode = #tpu.pipeline_mode<synchronous>, transform_indices = @transform_2, window_bounds = array<i64: 1, 32>}, {transform_indices = @transform_3, window_bounds = array<i64: 64, 32>}]} {
    %c0 = arith.constant 0 : index
    %c0_0 = arith.constant 0 : index
    %0 = vector.load %arg1[%c0, %c0_0] : memref<64x54xbf16, #tpu.memory_space<vmem>>, vector<64x54xbf16>
    %c0_1 = arith.constant 0 : index
    %c0_2 = arith.constant 0 : index
    %1 = vector.load %arg2[%c0_1, %c0_2] : memref<54x32xbf16, #tpu.memory_space<vmem>>, vector<54x32xbf16>
    %cst = arith.constant dense<0.000000e+00> : vector<64x32xf32>
    %2 = tpu.matmul %0, %1, %cst {dimension_numbers = #tpu.dot_dimension_numbers<[1], [0], [0], [1], [0, 0, 1, 1], [], []>} : vector<64x54xbf16>, vector<54x32xbf16>, vector<64x32xf32> -> vector<64x32xf32>
    %c0_3 = arith.constant 0 : index
    %c0_4 = arith.constant 0 : index
    %3 = vector.load %arg3[%c0_3, %c0_4] : memref<1x32xf32, #tpu.memory_space<vmem>>, vector<1x32xf32>
    %4 = vector.broadcast %3 : vector<1x32xf32> to vector<64x32xf32>
    %5 = arith.addf %2, %4 : vector<64x32xf32>
    %c0_5 = arith.constant 0 : index
    %c0_6 = arith.constant 0 : index
    %6 = vector.load %arg4[%c0_5, %c0_6] : memref<64x32xf32, #tpu.memory_space<vmem>>, vector<64x32xf32>
    tpu.vector_store %arg4[%c0_5, %c0_6], %5 {strides = array<i32>} : memref<64x32xf32, #tpu.memory_space<vmem>>, vector<64x32xf32>,
    return
  }
  func.func @transform_0(%arg0: i32) -> (i32, i32) {
    %c0_i32 = arith.constant 0 : i32
    %c0_i32_0 = arith.constant 0 : i32
    return %arg0, %c0_i32 : i32, i32
  }
  func.func @transform_1(%arg0: i32) -> (i32, i32) {
    %c0_i32 = arith.constant 0 : i32
    %c0_i32_0 = arith.constant 0 : i32
    %c0_i32_1 = arith.constant 0 : i32
    return %c0_i32, %c0_i32_0 : i32, i32
  }
  func.func @transform_2(%arg0: i32) -> (i32, i32) {
    %c0_i32 = arith.constant 0 : i32
    %c0_i32_0 = arith.constant 0 : i32
    %c0_i32_1 = arith.constant 0 : i32
    return %c0_i32, %c0_i32_0 : i32, i32
  }
  func.func @transform_3(%arg0: i32) -> (i32, i32) {
    %c0_i32 = arith.constant 0 : i32
    %c0_i32_0 = arith.constant 0 : i32
    return %arg0, %c0_i32 : i32, i32
  }
}

</mosaic_0001>

<bundles_post_ra>
// kernel: _conv_im2col.1
= control target key start
LH: loop header
LB: loop body
LE: loop exit
PB: predicated region body
PF: predicated region fallthrough
CT: control target
= control target key end

     0   :  { %vm89_vm0 = vcmask 1042432   ;;  %s291_s0 = inlined_call_operand.vmem [shape: bf16[64,54], index: 0, kind: input, shape index: {}]   ;;  %s292_s1 = inlined_call_operand.vmem [shape: bf16[54,32], index: 1, kind: input, shape index: {}]   ;;  %s293_s2 = inlined_call_operand.vmem [shape: f32[1,32], index: 2, kind: input, shape index: {}]   ;;  %s294_s3 = inlined_call_operand.hbm [shape: f32[64,32], index: 3, kind: output, shape index: {}]  }
   0x1   :  { %v30_v0 = vld [vmem:[%s292_s1 + $0x18] sm:$0x7] }
   0x2   :  { %v68_v1 = vunpack.c.l.b16 %v30_v0 }
   0x4   :  { %v72_v2 = vpack.c.b16 %v68_v1, %v68_v1 }
   0x5   :  { %8 = vsyncpa [#allocation3], 0  ;;  %v187_v4 = vld [vmem:[%s292_s1 + $0x10] sm:$0xff]  ;;  %v186_v5 = vld [vmem:[%s292_s1 + $0x8] sm:$0xff]  ;;  %vm76_vm1 = vcmask 441344   ;;  %vm122_vm2 = vcmask 261120  }
   0x6   :  { %v91_v3 = vsel %vm89_vm0, %v72_v2, 0  ;;  %v185_v6 = vld [vmem:[%s292_s1] sm:$0xff]  ;;  %v182_v8 = vld [vmem:[%s291_s0 + $0x8] sm:$0xff]  ;;  %v183_v9 = vld [vmem:[%s291_s0 + $0x10] sm:$0xff]  ;;  %s137_s4 = sshll.u32 %s294_s3, 4  ;;  %s231_s5 = smov 128   ;;  %s138_s4 = int_to_ptr.hbm [resolvable:$true] %s137_s4 }
   0x7   :  { %97 = vmatpush.bf16.msra.mxu0 %v91_v3  ;;  %188 = vmatpush.bf16.msra.mxu1 %v91_v3  ;;  %v181_v7 = vld [vmem:[%s291_s0] sm:$0xff]  ;;  %v184_v10 = vld [vmem:[%s291_s0 + $0x18] sm:$0xff]  ;;  %s230_s0 = smov [#allocation2]   ;;  %s232_s6 = smov 8  }
   0x8   :  { %189 = vmatpush.bf16.msra.mxu2 %v91_v3  ;;  %190 = vmatpush.bf16.msra.mxu3 %v91_v3  ;;  %v203_v11 = vld [vmem:[%s293_s2] ss:$0 sm:$0xff]  ;;  %s135_s2 = sshll.u32 %s230_s0, 4  ;;  %s136_s2 = int_to_ptr.vmem [resolvable:$true] %s135_s2 }
   0xb   :  { %98 = vmatpush.bf16.msra.mxu0 %v187_v4  ;;  %191 = vmatpush.bf16.msra.mxu1 %v187_v4 }
   0xc   :  { %192 = vmatpush.bf16.msra.mxu2 %v187_v4  ;;  %193 = vmatpush.bf16.msra.mxu3 %v187_v4 }
   0xf   :  { %99 = vmatpush.bf16.msra.mxu0 %v186_v5  ;;  %194 = vmatpush.bf16.msra.mxu1 %v186_v5 }
  0x10   :  { %195 = vmatpush.bf16.msra.mxu2 %v186_v5  ;;  %196 = vmatpush.bf16.msra.mxu3 %v186_v5 }
  0x13   :  { %100 = vmatpush.bf16.msra.mxu0 %v185_v6  ;;  %197 = vmatpush.bf16.msra.mxu1 %v185_v6 }
  0x14   :  { %198 = vmatpush.bf16.msra.mxu2 %v185_v6  ;;  %199 = vmatpush.bf16.msra.mxu3 %v185_v6 }
  0x16   :  { %177 = vmatmul.msk.bf16.vlgmr.msra.gmra.mxu0 %vm76_vm1, %v181_v7  ;;  %178 = vmatmul.msk.bf16.vlgmr.msra.gmra.mxu1 %vm76_vm1, %v182_v8 }
  0x17   :  { %179 = vmatmul.msk.bf16.vlgmr.msra.gmra.mxu2 %vm76_vm1, %v183_v9  ;;  %180 = vmatmul.msk.bf16.vlgmr.msra.gmra.mxu3 %vm76_vm1, %v184_v10 }
  0x93   :  { %v102_v12 = vpop.f32.mrf.mxu0  ;;  %v107_v13 = vpop.f32.mrf.mxu1 }
  0x94   :  { %v103_v14 = vadd.f32 %v203_v11, %v102_v12  ;;  %v108_v15 = vadd.f32 %v203_v11, %v107_v13 }
  0x96   :  { %123 = vst.msk [vmem:[#allocation2] sm:$0xff] %vm122_vm2, %v103_v14 }
  0x97   :  { %125 = vst.msk [vmem:[#allocation2 + $0x10] sm:$0xff] %vm122_vm2, %v108_v15 }
  0x9a   :  { %v112_v16 = vpop.f32.mrf.mxu2  ;;  %v117_v17 = vpop.f32.mrf.mxu3 }
  0x9b   :  { %v113_v18 = vadd.f32 %v203_v11, %v112_v16  ;;  %v118_v19 = vadd.f32 %v203_v11, %v117_v17  ;;  %v104_v20 = vpop.f32.mrf.mxu0  ;;  %v109_v21 = vpop.f32.mrf.mxu1 }
  0x9c   :  { %v105_v22 = vadd.f32 %v203_v11, %v104_v20  ;;  %v110_v23 = vadd.f32 %v203_v11, %v109_v21 }
  0x9d   :  { %127 = vst.msk [vmem:[#allocation2 + $0x20] sm:$0xff] %vm122_vm2, %v113_v18 }
  0x9e   :  { %129 = vst.msk [vmem:[#allocation2 + $0x30] sm:$0xff] %vm122_vm2, %v118_v19 }
  0x9f   :  { %124 = vst.msk [vmem:[#allocation2 + $0x8] sm:$0xff] %vm122_vm2, %v105_v22 }
  0xa0   :  { %126 = vst.msk [vmem:[#allocation2 + $0x18] sm:$0xff] %vm122_vm2, %v110_v23 }
  0xa2   :  { %v114_v24 = vpop.f32.mrf.mxu2  ;;  %v119_v25 = vpop.f32.mrf.mxu3 }
  0xa3   :  { %v115_v26 = vadd.f32 %v203_v11, %v114_v24  ;;  %v120_v27 = vadd.f32 %v203_v11, %v119_v25 }
  0xa5   :  { %128 = vst.msk [vmem:[#allocation2 + $0x28] sm:$0xff] %vm122_vm2, %v115_v26 }
  0xa6   :  { %130 = vst.msk [vmem:[#allocation2 + $0x38] sm:$0xff] %vm122_vm2, %v120_v27 }
  0xa7   :  { %143 = dma.vmem_to_hbm [thread:$0]  %s136_s2, 1024, %s138_s4, [#allocation3], %s231_s5, %s231_s5, %s232_s6  }
  0xa8   :  { %228 = dma.done.wait [#allocation3], 1024  }
  0xa9   :  { %229 = vsyncadd [#allocation3], 4294966272 }
  0xaa   :  { %148 = vsyncpa [#allocation3], 1 }

</bundles_post_ra>
